<compile_context>
chip_gen: v5e
topology: v5e:2x2
jax: 0.10.0
libtpu: 0.0.40
codegen_flags: <defaults>
</compile_context>

<pallas_src>
import math

import jax
import jax.numpy as jnp
from jax.experimental import pallas as pl
from jax.experimental.pallas import tpu as pltpu


# ---------------------------------------------------------------------------
# kernel
# ---------------------------------------------------------------------------
def _fs_relation_kernel(lvl_ref, scene_ref, feat_ref, w1_ref, wtop_ref, sh_ref,
                        out_ref):
    del lvl_ref                               # only consumed by the index_maps
    feat = feat_ref[0]                        # (THW, C)    bf16
    scene = scene_ref[0]                      # (1, C)      bf16
    shifts = sh_ref[0]                        # (2, C)      f32
    re_shift = shifts[0:1, :]                 # reencoder BN shift (conv bias folded in)
    pj_shift = shifts[1:2, :]                 # project   BN shift
    c = feat.shape[-1]

    # One lane-dense matmul computes both halves:
    #   h[:, :C] = feat @ (reencoder W * bn_scale)      (feature_reencoder conv)
    #   h[:, C:] = feat @ (project  W_bot * bn_scale)   (the `feat` rows of project)
    h = jnp.dot(feat, w1_ref[0], preferred_element_type=jnp.float32)   # (THW, 2C) f32
    p = jnp.maximum(h[:, :c] + re_shift, 0.0)                          # reencoder BN+ReLU
    h_bot = h[:, c:]                                                   # feat @ W_proj_bot

    # relation = Softmax(dim=channel)((scene * feat).sum(channel, keepdim=True)):
    # softmax over a size-1 axis is identically 1.0; keep the exp(s - s) form so
    # NaN/Inf propagate exactly like the reference.
    s = jnp.sum((feat * scene).astype(jnp.float32), axis=-1, keepdims=True)
    r = jnp.exp(s - s)                        # (THW, 1) == 1.0

    # project: Conv2d(2C, C, 1, bias=False) + BN + ReLU on concat([r*p, feat]).
    # concat([r*p, feat]) @ W  ==  (r*p) @ W_top + feat @ W_bot, and the second
    # term was already produced by the first matmul (h_bot).  Eval-mode
    # Dropout2d == identity.
    rp = (r * p).astype(feat.dtype)                                    # (THW, C) bf16
    y = jnp.dot(rp, wtop_ref[...], preferred_element_type=jnp.float32) + h_bot
    out_ref[0] = jnp.maximum(y + pj_shift, 0.0).astype(out_ref.dtype)


# ---------------------------------------------------------------------------
# small helpers (host-side / plain JAX glue)
# ---------------------------------------------------------------------------
def group_norm(x, gamma, beta, groups=32, eps=1e-5):
    n, c = x.shape
    xg = x.reshape(n, groups, c // groups)
    mean = xg.mean(axis=-1, keepdims=True)
    var = xg.var(axis=-1, keepdims=True)
    xn = ((xg - mean) / jnp.sqrt(var + eps)).reshape(n, c)
    return xn * gamma + beta


def scene_encoder(scene, p):
    # Conv2d(C_se, C, 1) + GroupNorm(32, C) + ReLU, twice.  Spatial is 1x1, so
    # this is a tiny (N, C) computation: keep it in plain JAX outside the kernel.
    h = scene @ p["w1"] + p["b1"]
    h = jnp.maximum(group_norm(h, p["gn1_g"], p["gn1_b"]), 0.0)
    h = h @ p["w2"] + p["b2"]
    h = jnp.maximum(group_norm(h, p["gn2_g"], p["gn2_b"]), 0.0)
    return h


def fold_bn(gamma, beta, mean, var, bias=None, eps=1e-5):
    scale = gamma / jnp.sqrt(var + eps)
    shift = beta - mean * scale
    if bias is not None:
        shift = shift + bias * scale
    return scale[None, :], shift[None, :]


# ---------------------------------------------------------------------------
# wrapper: one fused pallas_call over (batch, hw_tile) for all pyramid levels
# ---------------------------------------------------------------------------
def fs_relation(scene_feature, features, params, *, max_tile_rows=1024,
                compute_dtype=jnp.bfloat16):
    """Non-scale-aware FSRelation forward (eval mode).

    scene_feature: (N, C_SE)                 -- conceptually (N, C_SE, 1, 1)
    features:      list of (N, H*W, C)       -- NHWC, spatial flattened
    Returns a list of (N, H*W, C) arrays (same dtype as the inputs).
    """
    n = scene_feature.shape[0]
    c = features[0].shape[-1]
    hws = [f.shape[1] for f in features]
    out_dtype = features[0].dtype

    # ---- scene encoder (tiny): plain JAX, then cast for the kernel ----------
    scene = scene_encoder(scene_feature, params["scene"])          # (N, C) f32
    scene = scene[:, None, :].astype(compute_dtype)                # (N, 1, C)

    # ---- fold BN into weights / shifts and pack per-level parameters --------
    pj = params["project"]
    pj_scale, pj_shift = fold_bn(pj["bn_gamma"], pj["bn_beta"],
                                 pj["bn_mean"], pj["bn_var"])
    proj_w = pj["conv_w"] * pj_scale                               # (2C, C) f32
    w_top = proj_w[:c, :].astype(compute_dtype)                    # rows hit by r*p
    w_bot = proj_w[c:, :].astype(compute_dtype)                    # rows hit by feat

    w1_list, re_sh_list = [], []
    for lp in params["levels"]:
        scale, shift = fold_bn(lp["bn_gamma"], lp["bn_beta"], lp["bn_mean"],
                               lp["bn_var"], bias=lp["conv_b"])
        re_w = (lp["conv_w"] * scale).astype(compute_dtype)        # (C, C)
        w1_list.append(jnp.concatenate([re_w, w_bot], axis=1))     # (C, 2C)
        re_sh_list.append(shift)                                   # (1, C)
    w1_st = jnp.stack(w1_list, axis=0)                             # (L, C, 2C)

    shifts_st = jnp.stack(
        [jnp.concatenate([re_sh, pj_shift], axis=0) for re_sh in re_sh_list],
        axis=0).astype(jnp.float32)                                # (L, 2, C)

    # ---- pick an HW tile that divides every level (keeps blocks VMEM-small) -
    thw = 0
    for hw in hws:
        thw = math.gcd(thw, hw)
    while thw > max_tile_rows and thw % 2 == 0:
        thw //= 2
    assert thw % 8 == 0 and all(hw % thw == 0 for hw in hws), \
        "per-level H*W must share a tile size that is a multiple of 8"

    tiles_per_level = [hw // thw for hw in hws]
    num_tiles = int(sum(tiles_per_level))
    lvl_ids = jnp.concatenate(
        [jnp.full((t,), l, jnp.int32) for l, t in enumerate(tiles_per_level)])

    feat_cat = jnp.concatenate(features, axis=1).astype(compute_dtype)  # (N, HWt, C)
    hw_total = feat_cat.shape[1]

    out = pl.pallas_call(
        _fs_relation_kernel,
        out_shape=jax.ShapeDtypeStruct((n, hw_total, c), out_dtype),
        grid_spec=pltpu.PrefetchScalarGridSpec(
            num_scalar_prefetch=1,                     # lvl_ids -> SMEM
            grid=(n, num_tiles),
            in_specs=[
                pl.BlockSpec((1, 1, c),     lambda i, j, lvl: (i, 0, 0)),       # scene
                pl.BlockSpec((1, thw, c),   lambda i, j, lvl: (i, j, 0)),       # features
                pl.BlockSpec((1, c, 2 * c), lambda i, j, lvl: (lvl[j], 0, 0)),  # [re_w | w_bot]
                pl.BlockSpec((c, c),        lambda i, j, lvl: (0, 0)),          # w_top (shared)
                pl.BlockSpec((1, 2, c),     lambda i, j, lvl: (lvl[j], 0, 0)),  # packed shifts
            ],
            out_specs=pl.BlockSpec((1, thw, c), lambda i, j, lvl: (i, j, 0)),
        ),
        compiler_params=pltpu.CompilerParams(
            dimension_semantics=("parallel", "parallel")),
    )(lvl_ids, scene, feat_cat, w1_st, w_top, shifts_st)

    # split the fused output back into per-level feature maps
    outs, off = [], 0
    for hw in hws:
        outs.append(out[:, off:off + hw, :])
        off += hw
    return outs


# ---------------------------------------------------------------------------
# pure-JAX f32 reference (mirrors the PyTorch module, eval mode)
# ---------------------------------------------------------------------------
def fs_relation_ref(scene_feature, features, params, eps=1e-5):
    scene = scene_encoder(scene_feature, params["scene"])[:, None, :]    # (N,1,C)
    pj = params["project"]
    outs = []
    for feat, lp in zip(features, params["levels"]):
        # feature_reencoder: conv + BN + ReLU
        p = feat @ lp["conv_w"] + lp["conv_b"]
        p = (p - lp["bn_mean"]) / jnp.sqrt(lp["bn_var"] + eps) * lp["bn_gamma"] \
            + lp["bn_beta"]
        p = jnp.maximum(p, 0.0)
        # relation: softmax over a size-1 channel dim
        s = jnp.sum(scene * feat, axis=-1, keepdims=True)
        r = jax.nn.softmax(s, axis=-1)
        # project: conv(bias=False) + BN + ReLU (+ eval dropout)
        refined = jnp.concatenate([r * p, feat], axis=-1)
        y = refined @ pj["conv_w"]
        y = (y - pj["bn_mean"]) / jnp.sqrt(pj["bn_var"] + eps) * pj["bn_gamma"] \
            + pj["bn_beta"]
        outs.append(jnp.maximum(y, 0.0))
    return outs


# ---------------------------------------------------------------------------
if __name__ == "__main__":
    N = 2
    C_SE = 32                    # scene_embedding_channels
    C = 128                      # in_channels_list = [128, 128] -> max_channels = 128
    SPATIAL = [(16, 16), (8, 8)]

    keys = iter(jax.random.split(jax.random.PRNGKey(0), 64))
    nk = lambda: next(keys)

    # inputs (conceptually NCHW: scene (N, C_SE, 1, 1); features (N, C, H, W))
    scene_feature = jax.random.normal(nk(), (N, C_SE), jnp.float32)
    features = [jax.random.normal(nk(), (N, h * w, C), jnp.float32)
                for (h, w) in SPATIAL]

    params = dict(
        scene=dict(
            w1=0.05 * jax.random.normal(nk(), (C_SE, C), jnp.float32),
            b1=0.01 * jax.random.normal(nk(), (C,), jnp.float32),
            gn1_g=1.0 + 0.1 * jax.random.normal(nk(), (C,), jnp.float32),
            gn1_b=0.01 * jax.random.normal(nk(), (C,), jnp.float32),
            w2=0.05 * jax.random.normal(nk(), (C, C), jnp.float32),
            b2=0.01 * jax.random.normal(nk(), (C,), jnp.float32),
            gn2_g=1.0 + 0.1 * jax.random.normal(nk(), (C,), jnp.float32),
            gn2_b=0.01 * jax.random.normal(nk(), (C,), jnp.float32),
        ),
        levels=[
            dict(
                conv_w=0.05 * jax.random.normal(nk(), (C, C), jnp.float32),
                conv_b=0.01 * jax.random.normal(nk(), (C,), jnp.float32),
                bn_gamma=1.0 + 0.1 * jax.random.normal(nk(), (C,), jnp.float32),
                bn_beta=0.01 * jax.random.normal(nk(), (C,), jnp.float32),
                bn_mean=0.1 * jax.random.normal(nk(), (C,), jnp.float32),
                bn_var=1.0 + 0.1 * jax.random.uniform(nk(), (C,), jnp.float32),
            )
            for _ in SPATIAL
        ],
        project=dict(
            conv_w=0.05 * jax.random.normal(nk(), (2 * C, C), jnp.float32),
            bn_gamma=1.0 + 0.1 * jax.random.normal(nk(), (C,), jnp.float32),
            bn_beta=0.01 * jax.random.normal(nk(), (C,), jnp.float32),
            bn_mean=0.1 * jax.random.normal(nk(), (C,), jnp.float32),
            bn_var=1.0 + 0.1 * jax.random.uniform(nk(), (C,), jnp.float32),
        ),
    )

    outs = fs_relation(scene_feature, features, params)
    refs = fs_relation_ref(scene_feature, features, params)

    for o, rf, (h, w) in zip(outs, refs, SPATIAL):
        o = jax.block_until_ready(o)
        assert o.shape == (N, h * w, C)
        err = float(jnp.max(jnp.abs(o.astype(jnp.float32) - rf)))
        assert err < 6e-2, f"max abs err vs f32 reference: {err}"

    print("KERNEL_OK")
</pallas_src>

<mosaic_0001>
module attributes {stable_mosaic.version = 11 : i64} {
  func.func @_fs_relation_kernel(%arg0: i32, %arg1: i32, %arg2: memref<5xi32, #tpu.memory_space<smem>>, %arg3: memref<1x1x128xbf16, #tpu.memory_space<vmem>>, %arg4: memref<1x64x128xbf16, #tpu.memory_space<vmem>>, %arg5: memref<1x128x256xbf16, #tpu.memory_space<vmem>>, %arg6: memref<128x128xbf16, #tpu.memory_space<vmem>>, %arg7: memref<1x2x128xf32, #tpu.memory_space<vmem>>, %arg8: memref<1x64x128xf32, #tpu.memory_space<vmem>>) attributes {dimension_semantics = [#tpu.dimension_semantics<parallel>, #tpu.dimension_semantics<parallel>], iteration_bounds = array<i64: 2, 5>, scalar_prefetch = 1 : i64, scratch_operands = 0 : i64, tpu.core_type = #tpu.core_type<tc>, window_params = [{transform_indices = @transform_0, window_bounds = array<i64: 1, 1, 128>}, {transform_indices = @transform_1, window_bounds = array<i64: 1, 64, 128>}, {transform_indices = @transform_2, window_bounds = array<i64: 1, 128, 256>}, {pipeline_mode = #tpu.pipeline_mode<synchronous>, transform_indices = @transform_3, window_bounds = array<i64: 128, 128>}, {transform_indices = @transform_4, window_bounds = array<i64: 1, 2, 128>}, {transform_indices = @transform_5, window_bounds = array<i64: 1, 64, 128>}]} {
    %c0 = arith.constant 0 : index
    %c0_0 = arith.constant 0 : index
    %c0_1 = arith.constant 0 : index
    %0 = vector.load %arg4[%c0, %c0_0, %c0_1] : memref<1x64x128xbf16, #tpu.memory_space<vmem>>, vector<1x64x128xbf16>
    %1 = vector.shape_cast %0 : vector<1x64x128xbf16> to vector<64x128xbf16>
    %c0_2 = arith.constant 0 : index
    %c0_3 = arith.constant 0 : index
    %c0_4 = arith.constant 0 : index
    %2 = vector.load %arg3[%c0_2, %c0_3, %c0_4] : memref<1x1x128xbf16, #tpu.memory_space<vmem>>, vector<1x1x128xbf16>
    %3 = vector.shape_cast %2 : vector<1x1x128xbf16> to vector<1x128xbf16>
    %c0_5 = arith.constant 0 : index
    %c0_6 = arith.constant 0 : index
    %c0_7 = arith.constant 0 : index
    %4 = vector.load %arg7[%c0_5, %c0_6, %c0_7] : memref<1x2x128xf32, #tpu.memory_space<vmem>>, vector<1x2x128xf32>
    %5 = vector.shape_cast %4 : vector<1x2x128xf32> to vector<2x128xf32>
    %6 = vector.extract_strided_slice %5 {offsets = [0, 0], sizes = [1, 128], strides = [1, 1]} : vector<2x128xf32> to vector<1x128xf32>
    %7 = vector.extract_strided_slice %5 {offsets = [1, 0], sizes = [1, 128], strides = [1, 1]} : vector<2x128xf32> to vector<1x128xf32>
    %c0_8 = arith.constant 0 : index
    %c0_9 = arith.constant 0 : index
    %c0_10 = arith.constant 0 : index
    %8 = vector.load %arg5[%c0_8, %c0_9, %c0_10] : memref<1x128x256xbf16, #tpu.memory_space<vmem>>, vector<1x128x256xbf16>
    %9 = vector.shape_cast %8 : vector<1x128x256xbf16> to vector<128x256xbf16>
    %cst = arith.constant dense<0.000000e+00> : vector<64x256xf32>
    %10 = tpu.matmul %1, %9, %cst {dimension_numbers = #tpu.dot_dimension_numbers<[1], [0], [0], [1], [0, 0, 1, 1], [], []>} : vector<64x128xbf16>, vector<128x256xbf16>, vector<64x256xf32> -> vector<64x256xf32>
    %11 = vector.extract_strided_slice %10 {offsets = [0, 0], sizes = [64, 128], strides = [1, 1]} : vector<64x256xf32> to vector<64x128xf32>
    %12 = vector.broadcast %6 : vector<1x128xf32> to vector<64x128xf32>
    %13 = arith.addf %11, %12 : vector<64x128xf32>
    %cst_11 = arith.constant 0.000000e+00 : f32
    %14 = vector.broadcast %cst_11 : f32 to vector<64x128xf32>
    %15 = arith.maximumf %13, %14 : vector<64x128xf32>
    %16 = vector.extract_strided_slice %10 {offsets = [0, 128], sizes = [64, 128], strides = [1, 1]} : vector<64x256xf32> to vector<64x128xf32>
    %17 = vector.broadcast %3 : vector<1x128xbf16> to vector<64x128xbf16>
    %18 = arith.mulf %1, %17 : vector<64x128xbf16>
    %19 = arith.extf %18 : vector<64x128xbf16> to vector<64x128xf32>
    %cst_12 = arith.constant dense<0.000000e+00> : vector<64xf32>
    %20 = vector.multi_reduction <add>, %19, %cst_12 [1] : vector<64x128xf32> to vector<64xf32>
    %21 = vector.shape_cast %20 : vector<64xf32> to vector<64x1xf32>
    %22 = arith.subf %21, %21 : vector<64x1xf32>
    %23 = math.exp %22 : vector<64x1xf32>
    %24 = vector.broadcast %23 : vector<64x1xf32> to vector<64x128xf32>
    %25 = arith.mulf %24, %15 : vector<64x128xf32>
    %26 = arith.truncf %25 : vector<64x128xf32> to vector<64x128xbf16>
    %c0_13 = arith.constant 0 : index
    %c0_14 = arith.constant 0 : index
    %27 = vector.load %arg6[%c0_13, %c0_14] : memref<128x128xbf16, #tpu.memory_space<vmem>>, vector<128x128xbf16>
    %cst_15 = arith.constant dense<0.000000e+00> : vector<64x128xf32>
    %28 = tpu.matmul %26, %27, %cst_15 {dimension_numbers = #tpu.dot_dimension_numbers<[1], [0], [0], [1], [0, 0, 1, 1], [], []>} : vector<64x128xbf16>, vector<128x128xbf16>, vector<64x128xf32> -> vector<64x128xf32>
    %29 = arith.addf %28, %16 : vector<64x128xf32>
    %30 = vector.broadcast %7 : vector<1x128xf32> to vector<64x128xf32>
    %31 = arith.addf %29, %30 : vector<64x128xf32>
    %cst_16 = arith.constant 0.000000e+00 : f32
    %32 = vector.broadcast %cst_16 : f32 to vector<64x128xf32>
    %33 = arith.maximumf %31, %32 : vector<64x128xf32>
    %c0_17 = arith.constant 0 : index
    %c0_18 = arith.constant 0 : index
    %c0_19 = arith.constant 0 : index
    %34 = vector.load %arg8[%c0_17, %c0_18, %c0_19] : memref<1x64x128xf32, #tpu.memory_space<vmem>>, vector<1x64x128xf32>
    %35 = vector.shape_cast %34 : vector<1x64x128xf32> to vector<64x128xf32>
    %36 = vector.shape_cast %33 : vector<64x128xf32> to vector<1x64x128xf32>
    tpu.vector_store %arg8[%c0_17, %c0_18, %c0_19], %36 {strides = array<i32>} : memref<1x64x128xf32, #tpu.memory_space<vmem>>, vector<1x64x128xf32>,
    return
  }
  func.func @transform_0(%arg0: i32, %arg1: i32, %arg2: memref<5xi32, #tpu.memory_space<smem>>) -> (i32, i32, i32) {
    %c0_i32 = arith.constant 0 : i32
    %c0_i32_0 = arith.constant 0 : i32
    %c0_i32_1 = arith.constant 0 : i32
    return %arg0, %c0_i32, %c0_i32_0 : i32, i32, i32
  }
  func.func @transform_1(%arg0: i32, %arg1: i32, %arg2: memref<5xi32, #tpu.memory_space<smem>>) -> (i32, i32, i32) {
    %c0_i32 = arith.constant 0 : i32
    %c0_i32_0 = arith.constant 0 : i32
    return %arg0, %arg1, %c0_i32 : i32, i32, i32
  }
  func.func @transform_2(%arg0: i32, %arg1: i32, %arg2: memref<5xi32, #tpu.memory_space<smem>>) -> (i32, i32, i32) {
    %0 = arith.index_cast %arg1 : i32 to index
    %1 = memref.load %arg2[%0] : memref<5xi32, #tpu.memory_space<smem>>
    %c0_i32 = arith.constant 0 : i32
    %c0_i32_0 = arith.constant 0 : i32
    %c0_i32_1 = arith.constant 0 : i32
    return %1, %c0_i32, %c0_i32_0 : i32, i32, i32
  }
  func.func @transform_3(%arg0: i32, %arg1: i32, %arg2: memref<5xi32, #tpu.memory_space<smem>>) -> (i32, i32) {
    %c0_i32 = arith.constant 0 : i32
    %c0_i32_0 = arith.constant 0 : i32
    %c0_i32_1 = arith.constant 0 : i32
    return %c0_i32, %c0_i32_0 : i32, i32
  }
  func.func @transform_4(%arg0: i32, %arg1: i32, %arg2: memref<5xi32, #tpu.memory_space<smem>>) -> (i32, i32, i32) {
    %0 = arith.index_cast %arg1 : i32 to index
    %1 = memref.load %arg2[%0] : memref<5xi32, #tpu.memory_space<smem>>
    %c0_i32 = arith.constant 0 : i32
    %c0_i32_0 = arith.constant 0 : i32
    %c0_i32_1 = arith.constant 0 : i32
    return %1, %c0_i32, %c0_i32_0 : i32, i32, i32
  }
  func.func @transform_5(%arg0: i32, %arg1: i32, %arg2: memref<5xi32, #tpu.memory_space<smem>>) -> (i32, i32, i32) {
    %c0_i32 = arith.constant 0 : i32
    %c0_i32_0 = arith.constant 0 : i32
    return %arg0, %arg1, %c0_i32 : i32, i32, i32
  }
}

</mosaic_0001>

<bundles_post_ra>
// kernel: tpu_custom_call.1
= control target key start
LH: loop header
LB: loop body
LE: loop exit
PB: predicated region body
PF: predicated region fallthrough
CT: control target
= control target key end

     0   :  { %s1497_s24 = smov [#allocation3]   ;;  %s1892_s0 = inlined_call_operand.vmem [shape: s32[5], index: 0, kind: input, shape index: {}]   ;;  %s1893_s1 = inlined_call_operand.vmem [shape: bf16[2,1,128], index: 1, kind: input, shape index: {}]   ;;  %s1894_s2 = inlined_call_operand.hbm [shape: bf16[2,320,128], index: 2, kind: input, shape index: {}]   ;;  %s1895_s3 = inlined_call_operand.hbm [shape: bf16[2,128,256], index: 3, kind: input, shape index: {}]   ;;  %s1896_s4 = inlined_call_operand.hbm [shape: bf16[128,128], index: 4, kind: input, shape index: {}]   ;;  %s1897_s5 = inlined_call_operand.vmem [shape: f32[2,2,128], index: 5, kind: input, shape index: {}]   ;;  %s1898_s6 = inlined_call_operand.hbm [shape: f32[2,320,128], index: 6, kind: output, shape index: {}]  }
   0x1   :  { %1910 = sst [smem:[#allocation26_spill]] %s1896_s4  ;;  %s12_s23 = sshll.u32 %s1892_s0, 4  ;;  %s13_s23 = int_to_ptr.vmem [resolvable:$true] %s12_s23 }
   0x2   :  { %1911 = sst [smem:[#allocation27_spill]] %s1897_s5 }
   0x3   :  { %1912 = sst [smem:[#allocation28_spill]] %s1898_s6 }
   0x4   :  { %15 = dma.vmem_to_smem %s13_s23, 16, %s1497_s24, [#allocation2] }
   0x5   :  { %1435 = dma.done.wait [#allocation2], 16 }
   0x6   :  { %1436 = vsyncadd [#allocation2], 4294967280 }
   0x7   :  { %18 = sfence }
   0x8   :  { %19 = vsyncpa [#allocation5], 0 }
   0x9   :  { %21 = vsyncpa [#allocation5 + $0x1], 0 }
   0xa   :  { %22 = vsyncpa [#allocation8], 0 }
   0xb   :  { %24 = vsyncpa [#allocation8 + $0x1], 0 }
   0xc   :  { %25 = vsyncpa [#allocation6], 0 }
   0xd   :  { %27 = vsyncpa [#allocation6 + $0x1], 0  ;;  %s1543_s25 = smov 0   ;;  %s1545_s26 = smov 0  }
   0xe   :  { %s1547_s27 = smov 0   ;;  %s1549_s28 = smov 0  }
   0xf   :  { %s1551_s0 = smov 0   ;;  %s1553_s29 = smov 0  }
  0x10   :  { %s1555_s30 = smov 0   ;;  %s1557_s7 = smov 0  }
  0x11   :  { %s1559_s8 = smov 0   ;;  %s1561_s9 = smov 0  }
  0x12   :  { %s1563_s10 = smov 0  }
  0x13 LB: > { %1913 = sst [smem:[#allocation18_spill]] %s1467_s28  ;;  %s1597_s11 = sadd.s32 4294967295, %s1495_s10   ;;  %s1495_s10 = sphi %s1563_s10, %s33_s10   ;;  %s1491_s9 = sphi %s1561_s9, %s1942_s9   ;;  %s1487_s8 = sphi %s1559_s8, %s1949_s8   ;;  %s1483_s7 = sphi %s1557_s7, %s1940_s7   ;;  %s1479_s30 = sphi %s1555_s30, %s1948_s30   ;;  %s1475_s29 = sphi %s1553_s29, %s1939_s29   ;;  %s1471_s0 = sphi %s1551_s0, %s1947_s0   ;;  %s1467_s28 = sphi %s1549_s28, %s1946_s28   ;;  %s1463_s27 = sphi %s1547_s27, %s1945_s27   ;;  %s1459_s26 = sphi %s1545_s26, %s1944_s26   ;;  %s1455_s25 = sphi %s1543_s25, %s1943_s25  }
  0x14   : > { %1914 = sst [smem:[#allocation19_spill]] %s1475_s29  ;;  %p121_p0 = scmp.ne.s32.totalorder %s1459_s26, %s1455_s25 }
  0x15   : > { %1915 = sst [smem:[#allocation20_spill]] %s1479_s30  ;;  %p1909_p1 = scmp.eq.s32.totalorder %s1597_s11, 0 }
  0x16   : > { %1916 = sst [smem:[#allocation21_spill]] %s1491_s9  ;;  %p196_p2 = scmp.eq.s32.totalorder %s1597_s11, 9 }
  0x17   : > { %p945_p3 = scmp.ge.s32.totalorder %s1495_s10, 1  ;;  %p209_p4 = scmp.lt.s32.totalorder %s1495_s10, 11 }
  0x18   : > { %p1606_p5 = por %p121_p0, %p1909_p1  ;;  %s1919_s4 = sld [smem:[#allocation26_spill]] }
  0x19   : > { %p1610_p6 = pnand %p945_p3, %p209_p4  ;;  %s1498_s17 = smov [#allocation9]  }
  0x1a   : > { %s222_s18 = sshll.u32 %s1498_s17, 4  ;;  %s1899_s19 = smov 64   ;;  %s223_s18 = int_to_ptr.vmem [resolvable:$true] %s222_s18 }
  0x1b   : > { %p1128_p7 = pneg %p1610_p6  ;;  %s1900_s20 = smov 4  }
  0x1c   : > { %s944_s21 = sadd.s32 4294967294, %s1495_s10   ;;  %s42_s22 = sadd.s32 1, %s1487_s8 }
  0x1d   : > { %p1129_p8 = pnand %p1128_p7, %p1909_p1  ;;  %p43_p9 = scmp.ge.s32.totalorder %s42_s22, 5 }
  0x1e   : > { %s220_s16 = sshll.u32 %s1919_s4, 4  ;;  %s45_s23 = sadd.s32 1, %s1491_s9  ;;  %s221_s16 = int_to_ptr.hbm [resolvable:$true] %s220_s16 }
  0x1f   : > { %1131 = dma.hbm_to_vmem [thread:$0]  (!%p1129_p8), %s221_s16, 1024, %s223_s18, [#allocation8], %s1899_s19, %s1899_s19, %s1900_s20  }
  0x20   : > { %s80_s24 = sadd.s32 1, %s1475_s29  ;;  %p87_p10 = scmp.ne.s32.totalorder %s1475_s29, %s1471_s0 }
  0x21   : > { %s1951_s22 = smov (%p43_p9, %s42_s22), 0  ;;  %s1953_s23 = smov (!%p43_p9, %s45_s23), %s1491_s9 }
  0x22   : > { %1920 = sst [smem:[#allocation22_spill]] %s1951_s22  ;;  %s76_s25 = ssub.s32 %s1487_s8, %s1951_s22 }
  0x23   : > { %p88_p11 = scmp.eq.s32.totalorder %s1495_s10, 0  ;;  %p47_p12 = scmp.ge.s32.totalorder %s1953_s23, 2 }
  0x24   : > { %p93_p13 = scmp.ne.s32.totalorder %s1471_s0, %s1467_s28  ;;  %s103_s15 = sld [smem:[#allocation3 + %s1487_s8]] }
  0x25   : > { %p1643_p0 = por %p88_p11, %p87_p10  ;;  %s1955_s23 = smov (%p47_p12, %s1953_s23), 0 }
  0x26   : > { %1922 = sst [smem:[#allocation23_spill]] %s1955_s23  ;;  %p1652_p3 = por %p1909_p1, %p93_p13 }
  0x27   : > { %s104_s17 = sld [smem:[#allocation3 + %s1951_s22]]  ;;  %s75_s18 = ssub.s32 %s1491_s9, %s1955_s23 }
  0x28   : > { %p1664_p4 = por %p196_p2, %p87_p10  ;;  %s77_s20 = sor.u32 %s76_s25, %s75_s18 }
  0x29   : > { %p202_p7 = scmp.eq.s32.totalorder %s944_s21, 9  ;;  %p78_p8 = scmp.eq.s32.totalorder %s77_s20, 0 }
  0x2a   : > { %p1146_p9 = scmp.lt.s32.totalorder %s1495_s10, 10  ;;  %s242_s28 = sand.u32 1, %s1475_s29  }
  0x2b   : > { %p1669_p12 = por %p202_p7, %p93_p13  ;;  %s948_s22 = sshll.u32 %s242_s28, 5 }
  0x2c   : > { %s1675_s6 = scalar_select %p78_p8, %s1475_s29, %s80_s24  }
  0x2d   : > { %s1925_s4 = scalar_select %p1669_p12, 1, 0 }
  0x2e   : > { %1927 = sst [smem:[#allocation25_spill]] %s1675_s6  ;;  %s949_s23 = sshll.u32 %s1487_s8, 3 }
  0x2f   : > { %1926 = sst [smem:[#allocation24_spill]] %s1925_s4  ;;  %s1114_s5 = smul.u32 40, %s1491_s9 }
  0x30   : > { %s246_s30 = scalar_lea.vmem [#allocation4], %s948_s22  ;;  %p1133_p2 = pnand %p1146_p9, %p1643_p0 }
  0x31   : > { %s256_s25 = sshll.u32 %s246_s30, 4  ;;  %s251_s20 = sadd.s32 %s1114_s5, %s949_s23  ;;  %s257_s25 = int_to_ptr.vmem [resolvable:$true] %s256_s25 }
  0x32   : > { %s950_s21 = sshll.u32 %s251_s20, 2  ;;  %s105_s9 = ssub.s32 %s103_s15, %s104_s17 }
  0x33   : > { %s253_s6 = scalar_lea.hbm %s1894_s2, %s950_s21  ;;  %p106_p10 = scmp.eq.s32.totalorder %s105_s9, 0 }
  0x34   : > { %s254_s29 = sshll.u32 %s253_s6, 4  ;;  %s243_s30 = scalar_lea.sflag [#allocation5], %s242_s28  ;;  %s255_s29 = int_to_ptr.hbm [resolvable:$true] %s254_s29 }
  0x35   : > { %s1928_s22 = smov 4   ;;  %s1929_s14 = smov 64  }
  0x36   : > { %1135 = dma.hbm_to_vmem [thread:$0]  (!%p1133_p2), %s255_s29, 512, %s257_s25, %s243_s30, %s1929_s14, %s1929_s14, %s1928_s22  }
  0x37   : > { %s108_s4 = sadd.s32 1, %s1463_s27  ;;  %p115_p13 = scmp.ne.s32.totalorder %s1463_s27, %s1459_s26 }
  0x38   : > { %s1693_s5 = scalar_select %p106_p10, %s1463_s27, %s108_s4  }
  0x39   : > { %p117_p0 = por %p115_p13, %p88_p11  ;;  %s268_s23 = sand.u32 1, %s1463_s27  }
  0x3a   : > { %s951_s20 = sshll.u32 %s268_s23, 7  ;;  %s266_s29 = sand.u32 1, %s1495_s10  }
  0x3b   : > { %p1700_p7 = pnand %p1146_p9, %p117_p0  ;;  %s270_s4 = scalar_lea.vmem [#allocation7], %s951_s20 }
  0x3c   : > { %s1119_s15 = scalar_select %p117_p0, [#allocation3], [#allocation11] }
  0x3d   : > { %s1120_s9 = scalar_select %p117_p0, %s1487_s8, 0 }
  0x3e   : > { %s1957_s15 = smov (!%p1146_p9, %s1119_s15), [#allocation12]  ;;  %s279_s17 = sshll.u32 %s270_s4, 4  ;;  %s280_s17 = int_to_ptr.vmem [resolvable:$true] %s279_s17 }
  0x3f   : > { %s1959_s9 = smov (!%p1146_p9, %s1120_s9), 0  ;;  %s267_s22 = scalar_lea.sflag [#allocation8], %s266_s29 }
  0x40   : > { %s271_s28 = sld [smem:[%s1957_s15 + %s1959_s9]]  ;;  %p1337_p8 = pneg %p1700_p7 }
  0x41   : > { %s1340_s9 = scalar_lea.hbm %s1895_s3, 256 }
  0x46   : > { %s1077_s25 = sshll.u32 %s271_s28, 7 }
  0x47   : > { %s276_s18 = scalar_lea.hbm %s1895_s3, %s1077_s25 }
  0x48   : > { %s277_s30 = sshll.u32 %s276_s18, 4  ;;  %s278_s30 = int_to_ptr.hbm [resolvable:$true] %s277_s30 }
  0x49   : > { %s1333_s14 = sshra.s32 %s278_s30, 4  ;;  %s1334_s14 = int_to_ptr.hbm [resolvable:$true] %s1333_s14 }
  0x4a   : > { %s1335_s23 = scalar_lea.hbm %s1334_s14, 128  ;;  %p1341_p10 = scmp.lt.s32.totalorder %s1334_s14, %s1895_s3 }
  0x4b   : > { %p1336_p11 = scmp.ne.s32.totalorder %s1334_s14, %s1335_s23  ;;  %p1342_p13 = scmp.lt.s32.totalorder %s1340_s9, %s1335_s23 }
  0x4d   : > { %p1338_p9 = pnand %p1337_p8, %p1336_p11  ;;  %p1343_p0 = por %p1342_p13, %p1341_p10 }
  0x4f   : > { %p1339_p2 = pneg %p1338_p9 }
  0x51   : > { %p1344_p1 = pnand %p1343_p0, %p1339_p2 }
  0x53   : > { %1347 = shalt.err (!%p1344_p1)
}
  0x54   : > { %s1501_s29 = smov 128   ;;  %s1502_s25 = smov 8  }
  0x55   : > { %1140 = dma.hbm_to_vmem [thread:$0]  (!%p1700_p7), %s278_s30, 2048, %s280_s17, %s267_s22, %s1501_s29, %s1501_s29, %s1502_s25  }
  0x56   : > { %300 = sbr.rel (%p1610_p6) target bundleno = 473 (0x1d9), region = 40  ;;  %s1726_s21 = sand.u32 (!%p1610_p6), 1, %s1471_s0  }
  0x57   : > { %s955_s24 = sshll.u32 (!%p1610_p6), %s1726_s21, 5  ;;  %s303_s18 = scalar_lea.sflag (!%p1610_p6), [#allocation5], %s1726_s21 }
  0x58   : > { %s1730_s14 = scalar_lea.vmem (!%p1610_p6), [#allocation4], %s955_s24 }
  0x5b   : > { %1438 = dma.done.wait (%p1652_p3), %s303_s18, 512  }
  0x5c   : > { %1440 = vsyncadd (%p1652_p3), %s303_s18, 4294966784  ;;  %s312_s13 = sand.u32 1, %s1597_s11   ;;  %s314_s6 = sand.u32 1, %s1459_s26  }
  0x5d   : > { %s956_s17 = sshll.u32 %s314_s6, 7  ;;  %s313_s30 = scalar_lea.sflag [#allocation8], %s312_s13 }
  0x5e   : > { %s1738_s22 = scalar_lea.vmem [#allocation7], %s956_s17 }
  0x5f   : > { %1442 = dma.done.wait (%p1606_p5), %s313_s30, 2048  }
  0x60   : > { %1444 = vsyncadd (%p1606_p5), %s313_s30, 4294965248  ;;  %p1931_p1 = scmp.eq.s32.totalorder %s1597_s11, 0 }
  0x62   : > { %1446 = dma.done.wait (%p1931_p1), [#allocation8], 1024   ;;  %p1932_p6 = pmov %p1931_p1 }
  0x63   : > { %p362_p3 = scmp.lt.s32.totalorder %s1483_s7, 1  ;;  %v1034_v0 = vld [vmem:[%s1738_s22 + $0x70] sm:$0xf]  ;;  %v1097_v1 = vld [vmem:[%s1738_s22 + $0x74] sm:$0xf0]  ;;  %v374_v8 = vld [vmem:[%s1730_s14] sm:$0xff]  }
  0x64   : > { %1448 = vsyncadd (%p1932_p6), [#allocation8], 4294966272  ;;  %v1026_v2 = vld [vmem:[%s1738_s22 + $0x60] sm:$0xf]  ;;  %v1035_v3 = vor.u32 %v1097_v1, %v1034_v0  ;;  %v1095_v4 = vld [vmem:[%s1738_s22 + $0x64] sm:$0xf0]  ;;  %v583_v15 = vunpack.c.l.bf16 %v374_v8  ;;  %v584_v17 = vunpack.c.h.bf16 %v374_v8 }
  0x65   : > { %s363_s16 = scalar_select %p362_p3, %s1483_s7, 1  ;;  %v1027_v5 = vor.u32 %v1095_v4, %v1026_v2  ;;  %v1018_v6 = vld [vmem:[%s1738_s22 + $0x50] sm:$0xf]  ;;  %v1093_v7 = vld [vmem:[%s1738_s22 + $0x54] sm:$0xf0]  ;;  %v376_v10 = vld [vmem:[%s1730_s14 + $0x8] sm:$0xff]  }
  0x66   : > { %504 = vmatpush.bf16.msra.mxu0 %v1035_v3  ;;  %1106 = vmatpush.bf16.msra.mxu3 %v1035_v3  ;;  %v1019_v11 = vor.u32 %v1093_v7, %v1018_v6  ;;  %v1010_v13 = vld [vmem:[%s1738_s22 + $0x40] sm:$0xf]  ;;  %v1091_v14 = vld [vmem:[%s1738_s22 + $0x44] sm:$0xf0]  ;;  %v585_v18 = vunpack.c.l.bf16 %v376_v10  ;;  %v586_v19 = vunpack.c.h.bf16 %v376_v10  ;;  %v1002_v22 = vld [vmem:[%s1738_s22 + $0x30] sm:$0xf] }
  0x67   : > { %s364_s23 = scalar_lea.vmem %s1893_s1, %s363_s16  ;;  %v1011_v20 = vor.u32 %v1091_v14, %v1010_v13  ;;  %v1089_v23 = vld [vmem:[%s1738_s22 + $0x34] sm:$0xf0]  ;;  %v994_v31 = vld [vmem:[%s1738_s22 + $0x20] sm:$0xf]  ;;  %v1087_v32 = vld [vmem:[%s1738_s22 + $0x24] sm:$0xf0] }
  0x68   : > { %v382_v9 = vld [vmem:[%s364_s23] sm:$0x1]  ;;  %v1003_v28 = vor.u32 %v1089_v23, %v1002_v22  ;;  %v378_v35 = vld [vmem:[%s1730_s14 + $0x10] sm:$0xff]   ;;  %v995_v36 = vor.u32 %v1087_v32, %v994_v31  ;;  %v1085_v40 = vld [vmem:[%s1738_s22 + $0x14] sm:$0xf0]  ;;  %s1933_s15 = sld [smem:[#allocation20_spill]] }
  0x69   : > { %v580_v12 = vpack.i.b16 %v382_v9, %v382_v9  ;;  %v587_v37 = vunpack.c.l.bf16 %v378_v35  ;;  %v588_v38 = vunpack.c.h.bf16 %v378_v35  ;;  %v986_v39 = vld [vmem:[%s1738_s22 + $0x10] sm:$0xf]  ;;  %v978_v45 = vld [vmem:[%s1738_s22] sm:$0xf]  ;;  %v1083_v46 = vld [vmem:[%s1738_s22 + $0x4] sm:$0xf0] }
  0x6a   : > { %505 = vmatpush.bf16.msra.mxu0 %v1027_v5  ;;  %1107 = vmatpush.bf16.msra.mxu3 %v1027_v5  ;;  %v987_v43 = vor.u32 %v1085_v40, %v986_v39  ;;  %v979_v50 = vor.u32 %v1083_v46, %v978_v45  ;;  %v1773_v51 = vld [vmem:[%s1730_s14] sm:$0xff]  ;;  %v1776_v52 = vld [vmem:[%s1730_s14 + $0x8] sm:$0xff]  ;;  %v380_v54 = vld [vmem:[%s1730_s14 + $0x18] sm:$0xff]   ;;  %s1934_s29 = sld [smem:[#allocation27_spill]]  ;;  %s958_s24 = sshll.u32 %s1726_s21, 6 }
  0x6b   : > { %v582_v16 = vperm.slane %v580_v12, 0  ;;  %v1096_v55 = vld [vmem:[%s1738_s22 + $0x74] sm:$0xf]  ;;  %v1036_v56 = vld [vmem:[%s1738_s22 + $0x78] sm:$0xf0]  ;;  %v589_v57 = vunpack.c.l.bf16 %v380_v54  ;;  %v590_v58 = vunpack.c.h.bf16 %v380_v54  ;;  %v1098_v31 = vld [vmem:[#allocation9] sm:$0xff] }
  0x6c   : > { %v1039_v59 = vor.u32 %v1096_v55, %v1036_v56  ;;  %v1105_v60 = vld [vmem:[#allocation9 + $0x38] sm:$0xff]  ;;  %v1094_v61 = vld [vmem:[%s1738_s22 + $0x64] sm:$0xf]  ;;  %v1028_v62 = vld [vmem:[%s1738_s22 + $0x68] sm:$0xf0]  ;;  %s1828_s18 = scalar_lea.vmem [#allocation10], %s958_s24 }
  0x6d   : > { %v591_v21 = vunpack.c.l.bf16 %v582_v16  ;;  %v1031_v1 = vor.u32 %v1094_v61, %v1028_v62  ;;  %728 = vmatpush.bf16.msra.mxu2 %v1105_v60  ;;  %v1104_v2 = vld [vmem:[#allocation9 + $0x30] sm:$0xff]  ;;  %v1020_v4 = vld [vmem:[%s1738_s22 + $0x58] sm:$0xf0]  ;;  %v1090_v12 = vld [vmem:[%s1738_s22 + $0x44] sm:$0xf]  ;;  %s1935_s16 = sld [smem:[#allocation28_spill]] }
  0x6e   : > { %506 = vmatpush.bf16.msra.mxu0 %v1019_v11  ;;  %1108 = vmatpush.bf16.msra.mxu3 %v1019_v11  ;;  %v1092_v3 = vld [vmem:[%s1738_s22 + $0x54] sm:$0xf]  ;;  %v1792_v10 = vld [vmem:[%s1730_s14 + $0x18] sm:$0xff]  ;;  %v1103_v11 = vld [vmem:[#allocation9 + $0x28] sm:$0xff]  ;;  %s367_s20 = sld [smem:[#allocation3 + %s1933_s15]]  ;;  %s1073_s13 = sshll.u32 %s1933_s15, 3 }
  0x6f   : > { %v592_v24 = vmul.f32 %v591_v21, %v583_v15  ;;  %v593_v25 = vmul.f32 %v591_v21, %v584_v17  ;;  %v594_v26 = vmul.f32 %v591_v21, %v585_v18  ;;  %v595_v27 = vmul.f32 %v591_v21, %v586_v19  ;;  %533 = vmatpush.bf16.msra.mxu1 %v1039_v59  ;;  %v1788_v9 = vld [vmem:[%s1730_s14 + $0x10] sm:$0xff]  ;;  %v1012_v13 = vld [vmem:[%s1738_s22 + $0x48] sm:$0xf0]  ;;  %v1102_v15 = vld [vmem:[#allocation9 + $0x20] sm:$0xff]  ;;  %s1115_s14 = smul.u32 40, %s1483_s7  ;;  %s797_s12 = sshll.u32 %s1828_s18, 4  ;;  %s798_s12 = int_to_ptr.vmem [resolvable:$true] %s797_s12 }
  0x70   : > { %v596_v41 = vmul.f32 %v591_v21, %v587_v37  ;;  %v597_v42 = vmul.f32 %v591_v21, %v588_v38  ;;  %v598_v63 = vmul.f32 %v591_v21, %v589_v57  ;;  %v599_v0 = vmul.f32 %v591_v21, %v590_v58  ;;  %v1088_v16 = vld [vmem:[%s1738_s22 + $0x34] sm:$0xf]  ;;  %v1004_v17 = vld [vmem:[%s1738_s22 + $0x38] sm:$0xf0]  ;;  %v996_v21 = vld [vmem:[%s1738_s22 + $0x28] sm:$0xf0] }
  0x71   : > { %v600_v29 = vpack.c.bf16 %v593_v25, %v592_v24  ;;  %v601_v30 = vpack.c.bf16 %v595_v27, %v594_v26  ;;  %v1023_v8 = vor.u32 %v1092_v3, %v1020_v4  ;;  %729 = vmatpush.bf16.msra.mxu2 %v1104_v2  ;;  %v1015_v14 = vor.u32 %v1090_v12, %v1012_v13  ;;  %v1101_v19 = vld [vmem:[#allocation9 + $0x18] sm:$0xff]  ;;  %v1100_v23 = vld [vmem:[#allocation9 + $0x10] sm:$0xff]  ;;  %v1099_v27 = vld [vmem:[#allocation9 + $0x8] sm:$0xff]  ;;  %s794_s6 = sadd.s32 %s1115_s14, %s1073_s13  ;;  %s783_s23 = scalar_lea.sflag [#allocation6], %s1726_s21 }
  0x72   : > { %507 = vmatpush.bf16.msra.mxu0 %v1011_v20  ;;  %1109 = vmatpush.bf16.msra.mxu3 %v1011_v20  ;;  %v602_v44 = vpack.c.bf16 %v597_v42, %v596_v41  ;;  %v603_v5 = vpack.c.bf16 %v599_v0, %v598_v63  ;;  %v1007_v18 = vor.u32 %v1088_v16, %v1004_v17  ;;  %v1086_v20 = vld [vmem:[%s1738_s22 + $0x24] sm:$0xf]  ;;  %v1084_v24 = vld [vmem:[%s1738_s22 + $0x14] sm:$0xf]  ;;  %v988_v25 = vld [vmem:[%s1738_s22 + $0x18] sm:$0xf0] }
  0x73   : > { %v604_v33 = vunpack.c.l.bf16 %v600_v29  ;;  %v606_v34 = vunpack.c.l.bf16 %v601_v30  ;;  %v605_v47 = vunpack.c.h.bf16 %v600_v29  ;;  %v607_v48 = vunpack.c.h.bf16 %v601_v30  ;;  %534 = vmatpush.bf16.msra.mxu1 %v1031_v1  ;;  %v980_v29 = vld [vmem:[%s1738_s22 + $0x8] sm:$0xf0]  ;;  %s1074_s17 = sshll.u32 %s794_s6, 3  ;;  %s1383_s4 = scalar_lea.hbm %s1935_s16, 640 }
  0x74   : > { %v608_v49 = vunpack.c.l.bf16 %v602_v44  ;;  %v609_v53 = vunpack.c.h.bf16 %v602_v44  ;;  %v611_v6 = vunpack.c.h.bf16 %v603_v5  ;;  %v610_v7 = vunpack.c.l.bf16 %v603_v5  ;;  %p368_p5 = scmp.lt.s32.totalorder %s367_s20, 1  ;;  %s796_s11 = scalar_lea.hbm %s1935_s16, %s1074_s17 }
  0x75   : > { %612 = vadd.xlane.f32.xlu0 %v604_v33  ;;  %616 = vadd.xlane.f32.xlu1 %v606_v34  ;;  %v999_v22 = vor.u32 %v1086_v20, %v996_v21  ;;  %v991_v26 = vor.u32 %v1084_v24, %v988_v25  ;;  %s799_s7 = sshll.u32 %s796_s11, 4  ;;  %s800_s7 = int_to_ptr.hbm [resolvable:$true] %s799_s7 }
  0x76   : > { %508 = vmatpush.bf16.msra.mxu0 %v1003_v28  ;;  %1110 = vmatpush.bf16.msra.mxu3 %v1003_v28  ;;  %v1082_v28 = vld [vmem:[%s1738_s22 + $0x4] sm:$0xf]  ;;  %s1961_s20 = smov (!%p368_p5, %s367_s20), 1  ;;  %s1377_s15 = sshra.s32 %s800_s7, 4  ;;  %s1378_s15 = int_to_ptr.hbm [resolvable:$true] %s1377_s15 }
  0x77   : > { %620 = vadd.xlane.f32.xlu2 %v608_v49  ;;  %535 = vmatpush.bf16.msra.mxu1 %v1023_v8  ;;  %v983_v30 = vor.u32 %v1082_v28, %v980_v29  ;;  %s959_s9 = sshll.u32 %s1961_s20, 1  ;;  %s1379_s20 = scalar_lea.hbm %s1378_s15, 64 }
  0x78   : > { %730 = vmatpush.bf16.msra.mxu2 %v1103_v11  ;;  %s371_s25 = scalar_lea.vmem %s1934_s29, %s959_s9  ;;  %p1380_p7 = scmp.ne.s32.totalorder %s1378_s15, %s1379_s20 }
  0x79   : > { %v1810_v37 = vld [vmem:[%s371_s25] sm:$0x3]  ;;  %p1384_p9 = scmp.lt.s32.totalorder %s1378_s15, %s1935_s16  ;;  %p1385_p2 = scmp.lt.s32.totalorder %s1383_s4, %s1379_s20 }
  0x7a   : > { %509 = vmatpush.bf16.msra.mxu0 %v995_v36  ;;  %1111 = vmatpush.bf16.msra.mxu3 %v995_v36  ;;  %v1814_v41 = vperm.slane %v1810_v37, 0  ;;  %p1381_p11 = pnand %p1380_p7, %p1664_p4 }
  0x7b   : > { %536 = vmatpush.bf16.msra.mxu1 %v1015_v14  ;;  %p1386_p10 = por %p1385_p2, %p1384_p9 }
  0x7c   : > { %731 = vmatpush.bf16.msra.mxu2 %v1102_v15  ;;  %p1382_p8 = pneg %p1381_p11 }
  0x7d   : > { %614 = vadd.xlane.f32.xlu0 %v605_v47  ;;  %618 = vadd.xlane.f32.xlu1 %v607_v48 }
  0x7e   : > { %510 = vmatpush.bf16.msra.mxu0 %v987_v43  ;;  %1112 = vmatpush.bf16.msra.mxu3 %v987_v43  ;;  %p1387_p13 = pnand %p1386_p10, %p1382_p8 }
  0x7f   : > { %622 = vadd.xlane.f32.xlu2 %v609_v53  ;;  %537 = vmatpush.bf16.msra.mxu1 %v1007_v18 }
  0x80   : > { %732 = vmatpush.bf16.msra.mxu2 %v1101_v19 }
  0x82   : > { %511 = vmatpush.bf16.msra.mxu0 %v979_v50  ;;  %1113 = vmatpush.bf16.msra.mxu3 %v979_v50 }
  0x83   : > { %538 = vmatpush.bf16.msra.mxu1 %v999_v22 }
  0x84   : > { %733 = vmatpush.bf16.msra.mxu2 %v1100_v23 }
  0x85   : > { %512 = vmatmul.bf16.vlgmr.msra.gmra.mxu0 %v1773_v51  ;;  %517 = vmatmul.bf16.vlgmr.msra.gmra.mxu3 %v1776_v52 }
  0x86   : > { %626 = vadd.xlane.f32.xlu1 %v611_v6  ;;  %624 = vadd.xlane.f32.xlu0 %v610_v7 }
  0x87   : > { %539 = vmatpush.bf16.msra.mxu1 %v991_v26 }
  0x88   : > { %734 = vmatpush.bf16.msra.mxu2 %v1099_v27 }
  0x8b   : > { %540 = vmatpush.bf16.msra.mxu1 %v983_v30 }
  0x8c   : > { %735 = vmatpush.bf16.msra.mxu2 %v1098_v31 }
  0x8e   : > { %541 = vmatmul.bf16.vlgmr.msra.gmra.mxu1 %v1773_v51 }
  0x95   : > { %522 = vmatmul.bf16.gmra.mxu3 %v1788_v9 }
  0x9e   : > { %546 = vmatmul.bf16.gmra.mxu1 %v1776_v52 }
  0xa5   : > { %527 = vmatmul.bf16.gmra.mxu3 %v1792_v10 }
  0xae   : > { %551 = vmatmul.bf16.gmra.mxu1 %v1788_v9 }
  0xbe   : > { %556 = vmatmul.bf16.gmra.mxu1 %v1792_v10 }
  0xe8   : > { %v613_v32 = vpop.xlane.xlu0 %612  ;;  %v617_v36 = vpop.xlane.xlu1 %616 }
  0xe9   : > { %v628_v34 = vsub.f32 %v613_v32, %v613_v32  ;;  %v630_v48 = vsub.f32 %v617_v36, %v617_v36 }
  0xea   : > { %v621_v56 = vpop.xlane.xlu2 %620 }
  0xeb   : > { %v636_v38 = vmul.f32 1.442695, %v628_v34  ;;  %v640_v54 = vmul.f32 1.442695, %v630_v48  ;;  %v632_v4 = vsub.f32 %v621_v56, %v621_v56 }
  0xed   : > { %1245 = vpow2.f32 %v636_v38  ;;  %v644_v8 = vmul.f32 1.442695, %v632_v4 }
  0xf0   : > { %v615_v33 = vpop.xlane.xlu0 %614  ;;  %v619_v44 = vpop.xlane.xlu1 %618 }
  0xf1   : > { %v629_v35 = vsub.f32 %v615_v33, %v615_v33  ;;  %v631_v51 = vsub.f32 %v619_v44, %v619_v44 }
  0xf2   : > { %v623_v2 = vpop.xlane.xlu2 %622 }
  0xf3   : > { %v638_v40 = vmul.f32 1.442695, %v629_v35  ;;  %v1246_v46 = vpop.eup %1245  ;;  %v642_v57 = vmul.f32 1.442695, %v631_v51  ;;  %v633_v5 = vsub.f32 %v623_v2, %v623_v2 }
  0xf5   : > { %1247 = vpow2.f32 %v638_v40  ;;  %v646_v11 = vmul.f32 1.442695, %v633_v5 }
  0xf6   : > { %1249 = vpow2.f32 %v640_v54 }
  0xf7   : > { %1251 = vpow2.f32 %v642_v57 }
  0xf8   : > { %1253 = vpow2.f32 %v644_v8 }
  0xf9   : > { %1255 = vpow2.f32 %v646_v11  ;;  %v627_v16 = vpop.xlane.xlu1 %626  ;;  %v625_v20 = vpop.xlane.xlu0 %624 }
  0xfa   : > { %v635_v22 = vsub.f32 %v627_v16, %v627_v16  ;;  %v634_v23 = vsub.f32 %v625_v20, %v625_v20 }
  0xfb   : > { %v1248_v50 = vpop.eup %1247 }
  0xfc   : > { %v1250_v63 = vpop.eup %1249  ;;  %v650_v26 = vmul.f32 1.442695, %v635_v22  ;;  %v648_v10 = vmul.f32 1.442695, %v634_v23 }
  0xfd   : > { %v1252_v3 = vpop.eup %1251 }
  0xfe   : > { %v1254_v17 = vpop.eup %1253  ;;  %1257 = vpow2.f32 %v650_v26 }
  0xff   : > { %v1256_v21 = vpop.eup %1255  ;;  %1259 = vpow2.f32 %v648_v10 }
 0x102   : > { %v513_v39 = vpop.f32.mrf.mxu0 }
 0x103   : > { %v563_v42 = vadd.f32 %v1814_v41, %v513_v39 }
 0x104   : > { %v1258_v31 = vpop.eup %1257 }
 0x105   : > { %v571_v47 = vmax.f32 %v563_v42, 0.0  ;;  %v1260_v34 = vpop.eup %1259  ;;  %v757_v42 = vperm.slane %v1810_v37, 1 }
 0x107   : > { %v652_v53 = vmul.f32 %v1246_v46, %v571_v47 }
 0x108   : > { %v518_v43 = vpop.f32.mrf.mxu3 }
 0x109   : > { %v565_v60 = vadd.f32 %v1814_v41, %v518_v43 }
 0x10a   : > { %v515_v45 = vpop.f32.mrf.mxu0 }
 0x10b   : > { %v564_v49 = vadd.f32 %v1814_v41, %v515_v45  ;;  %v573_v0 = vmax.f32 %v565_v60, 0.0  ;;  %v542_v39 = vpop.f32.mrf.mxu1 }
 0x10d   : > { %v572_v52 = vmax.f32 %v564_v49, 0.0  ;;  %v654_v6 = vmul.f32 %v1250_v63, %v573_v0 }
 0x10f   : > { %v653_v55 = vmul.f32 %v1248_v50, %v572_v52 }
 0x110   : > { %v520_v58 = vpop.f32.mrf.mxu3 }
 0x111   : > { %v660_v59 = vpack.c.bf16 %v653_v55, %v652_v53  ;;  %v566_v61 = vadd.f32 %v1814_v41, %v520_v58 }
 0x113   : > { %736 = vmatmul.bf16.vlgmr.msra.gmra.mxu2 %v660_v59  ;;  %v574_v1 = vmax.f32 %v566_v61, 0.0  ;;  %v544_v40 = vpop.f32.mrf.mxu1 }
 0x115   : > { %v655_v7 = vmul.f32 %v1252_v3, %v574_v1 }
 0x117   : > { %v661_v12 = vpack.c.bf16 %v655_v7, %v654_v6 }
 0x118   : > { %v523_v62 = vpop.f32.mrf.mxu3 }
 0x119   : > { %v567_v13 = vadd.f32 %v1814_v41, %v523_v62 }
 0x11b   : > { %v575_v18 = vmax.f32 %v567_v13, 0.0  ;;  %v547_v47 = vpop.f32.mrf.mxu1 }
 0x11d   : > { %v656_v24 = vmul.f32 %v1254_v17, %v575_v18 }
 0x120   : > { %v525_v9 = vpop.f32.mrf.mxu3 }
 0x121   : > { %v568_v14 = vadd.f32 %v1814_v41, %v525_v9 }
 0x123   : > { %741 = vmatmul.bf16.gmra.mxu2 %v661_v12  ;;  %v576_v19 = vmax.f32 %v568_v14, 0.0  ;;  %v549_v51 = vpop.f32.mrf.mxu1 }
 0x125   : > { %v657_v25 = vmul.f32 %v1256_v21, %v576_v19 }
 0x127   : > { %v662_v27 = vpack.c.bf16 %v657_v25, %v656_v24 }
 0x128   : > { %v528_v15 = vpop.f32.mrf.mxu3 }
 0x129   : > { %v569_v29 = vadd.f32 %v1814_v41, %v528_v15 }
 0x12b   : > { %v577_v32 = vmax.f32 %v569_v29, 0.0  ;;  %v552_v57 = vpop.f32.mrf.mxu1 }
 0x12d   : > { %v658_v36 = vmul.f32 %v1260_v34, %v577_v32 }
 0x130   : > { %v530_v28 = vpop.f32.mrf.mxu3 }
 0x131   : > { %v570_v30 = vadd.f32 %v1814_v41, %v530_v28 }
 0x133   : > { %746 = vmatmul.bf16.gmra.mxu2 %v662_v27  ;;  %v578_v33 = vmax.f32 %v570_v30, 0.0  ;;  %v554_v63 = vpop.f32.mrf.mxu1 }
 0x135   : > { %v659_v35 = vmul.f32 %v1258_v31, %v578_v33 }
 0x137   : > { %v663_v38 = vpack.c.bf16 %v659_v35, %v658_v36 }
 0x13b   : > { %v557_v5 = vpop.f32.mrf.mxu1 }
 0x143   : > { %751 = vmatmul.bf16.gmra.mxu2 %v663_v38  ;;  %v559_v9 = vpop.f32.mrf.mxu1 }
 0x196   : > { %v737_v43 = vpop.f32.mrf.mxu2 }
 0x197   : > { %v738_v44 = vadd.f32 %v737_v43, %v542_v39 }
 0x199   : > { %v758_v45 = vadd.f32 %v757_v42, %v738_v44 }
 0x19b   : > { %v766_v46 = vmax.f32 %v758_v45, 0.0 }
 0x19d   : > { %774 = vst [vmem:[%s1828_s18] sm:$0xff] %v766_v46 }
 0x19e   : > { %v739_v41 = vpop.f32.mrf.mxu2 }
 0x19f   : > { %v740_v48 = vadd.f32 %v739_v41, %v544_v40 }
 0x1a1   : > { %v759_v49 = vadd.f32 %v757_v42, %v740_v48 }
 0x1a3   : > { %v767_v50 = vmax.f32 %v759_v49, 0.0 }
 0x1a5   : > { %775 = vst [vmem:[%s1828_s18 + $0x8] sm:$0xff] %v767_v50 }
 0x1a6   : > { %v742_v37 = vpop.f32.mrf.mxu2 }
 0x1a7   : > { %v743_v52 = vadd.f32 %v742_v37, %v547_v47 }
 0x1a9   : > { %v760_v53 = vadd.f32 %v757_v42, %v743_v52 }
 0x1ab   : > { %v768_v54 = vmax.f32 %v760_v53, 0.0 }
 0x1ad   : > { %776 = vst [vmem:[%s1828_s18 + $0x10] sm:$0xff] %v768_v54 }
 0x1ae   : > { %v744_v55 = vpop.f32.mrf.mxu2 }
 0x1af   : > { %v745_v56 = vadd.f32 %v744_v55, %v549_v51 }
 0x1b1   : > { %v761_v58 = vadd.f32 %v757_v42, %v745_v56 }
 0x1b3   : > { %v769_v59 = vmax.f32 %v761_v58, 0.0 }
 0x1b5   : > { %777 = vst [vmem:[%s1828_s18 + $0x18] sm:$0xff] %v769_v59 }
 0x1b6   : > { %v747_v60 = vpop.f32.mrf.mxu2 }
 0x1b7   : > { %v748_v61 = vadd.f32 %v747_v60, %v552_v57 }
 0x1b9   : > { %v762_v62 = vadd.f32 %v757_v42, %v748_v61 }
 0x1bb   : > { %v770_v0 = vmax.f32 %v762_v62, 0.0 }
 0x1bd   : > { %778 = vst [vmem:[%s1828_s18 + $0x20] sm:$0xff] %v770_v0 }
 0x1be   : > { %v749_v1 = vpop.f32.mrf.mxu2 }
 0x1bf   : > { %v750_v2 = vadd.f32 %v749_v1, %v554_v63 }
 0x1c1   : > { %v763_v3 = vadd.f32 %v757_v42, %v750_v2 }
 0x1c3   : > { %v771_v4 = vmax.f32 %v763_v3, 0.0 }
 0x1c5   : > { %779 = vst [vmem:[%s1828_s18 + $0x28] sm:$0xff] %v771_v4 }
 0x1c6   : > { %v752_v6 = vpop.f32.mrf.mxu2 }
 0x1c7   : > { %v753_v7 = vadd.f32 %v752_v6, %v557_v5 }
 0x1c9   : > { %v764_v8 = vadd.f32 %v757_v42, %v753_v7 }
 0x1cb   : > { %v772_v11 = vmax.f32 %v764_v8, 0.0 }
 0x1cd   : > { %780 = vst [vmem:[%s1828_s18 + $0x30] sm:$0xff] %v772_v11 }
 0x1ce   : > { %v754_v12 = vpop.f32.mrf.mxu2 }
 0x1cf   : > { %v755_v13 = vadd.f32 %v754_v12, %v559_v9 }
 0x1d1   : > { %v765_v14 = vadd.f32 %v757_v42, %v755_v13 }
 0x1d3   : > { %v773_v15 = vmax.f32 %v765_v14, 0.0 }
 0x1d5   : > { %781 = vst [vmem:[%s1828_s18 + $0x38] sm:$0xff] %v773_v15 }
 0x1d6   : > { %1390 = shalt.err (!%p1387_p13)
}
 0x1d7   : > { %s1503_s21 = smov 128   ;;  %s1504_s24 = smov 8  }
 0x1d8   : > { %1126 = dma.vmem_to_hbm [thread:$0]  (%p1664_p4), %s798_s12, 1024, %s800_s7, %s783_s23, %s1503_s21, %s1503_s21, %s1504_s24  }
 0x1d9 PF: > { %s1936_s18 = sld [smem:[#allocation18_spill]]  ;;  %p1148_p0 = scmp.ge.s32.totalorder %s1495_s10, 2 }
 0x1db   : > { %p1142_p1 = pnand %p1148_p0, %p1669_p12 }
 0x1dd   : > { %p1143_p6 = pneg %p1142_p1 }
 0x1df   : > { %s814_s13 = sand.u32 1, %s1936_s18  }
 0x1e0   : > { %s815_s6 = scalar_lea.sflag [#allocation6], %s814_s13 }
 0x1e1   : > { %1450 = dma.done.wait (%p1143_p6), %s815_s6, 1024  }
 0x1e2   : > { %1452 = vsyncadd (%p1143_p6), %s815_s6, 4294966272  ;;  %s33_s10 = sadd.s32 1, %s1495_s10   ;;  %s1938_s19 = sld [smem:[#allocation19_spill]] }
 0x1e3   : > { %p30_p3 = scmp.ge.s32.totalorder %s33_s10, 12   ;;  %s1939_s29 = sld [smem:[#allocation25_spill]] }
 0x1e4   : > { %s1940_s7 = sld [smem:[#allocation21_spill]]  ;;  %s1943_s25 = smov %s1459_s26 }
 0x1e5   : > { %s1941_s17 = sld [smem:[#allocation22_spill]]  ;;  %s1944_s26 = smov %s1463_s27 }
 0x1e6   : > { %s1942_s9 = sld [smem:[#allocation23_spill]]  ;;  %s1945_s27 = smov %s1693_s5 }
 0x1e7   : > { %s1946_s28 = smov %s1471_s0  ;;  %s1948_s30 = smov %s1487_s8 }
 0x1e8   : > { %s1947_s0 = smov %s1938_s19  ;;  %32 = sbr.rel (!%p30_p3) target bundleno = 19 (0x13), region = 108 }
 0x1eb   : > { %s1949_s8 = smov %s1941_s17 }
 0x1ed   :  { %821 = vsyncpa [#allocation5], 1 }
 0x1ee   :  { %823 = vsyncpa [#allocation5 + $0x1], 1 }
 0x1ef   :  { %824 = vsyncpa [#allocation8], 1 }
 0x1f0   :  { %826 = vsyncpa [#allocation8 + $0x1], 1 }
 0x1f1   :  { %827 = vsyncpa [#allocation6], 1 }
 0x1f2   :  { %829 = vsyncpa [#allocation6 + $0x1], 1 }

</bundles_post_ra>
